<compile_context>
chip_gen: v7x
topology: tpu7x:2x2x1
jax: 0.10.0
libtpu: 0.0.40
codegen_flags: <defaults>
</compile_context>

<pallas_src>
import math
import functools

import jax
import jax.numpy as jnp
from jax.experimental import pallas as pl
from jax.experimental.pallas import tpu as pltpu


def _round_up(x, m):
    return ((x + m - 1) // m) * m


def _largest_aligned_divisor(total, target, align):
    """Largest multiple of `align` that divides `total` and is <= max(target, align)."""
    target = max(target - target % align, align)
    t = min(target, total)
    t -= t % align
    t = max(t, align)
    while t > align and total % t != 0:
        t -= align
    return t


def _pick_batch_tile(n, tile_n):
    """Pick (tn, n_padded) with tn % 8 == 0, tn | n_padded, minimal padding."""
    n8 = _round_up(n, 8)
    if n8 <= tile_n:
        return n8, n8
    tn = _largest_aligned_divisor(n8, tile_n, 8)
    if tn * 4 < tile_n:
        # Divisor is tiny (poor per-step amortization): accept some padding.
        tn = max(_round_up(tile_n // 2, 8), 8)
        return tn, _round_up(n, tn)
    return tn, n8


# ----------------------------------------------------------------------------
# Kernel
# ----------------------------------------------------------------------------
def _kan_kernel(x_ref, gneg_ref, gpos_ref, w_ref, o_ref, slab_ref, *,
                grid_size, in_p, inv_sigma):
    """One (out-tile, batch-tile) block of the KAN forward.

    x_ref    : (TN, in_p)              f32 input rows (zero-padded features)
    gneg_ref : (grid_size, in_p)       exp(-grid/sigma)
    gpos_ref : (grid_size, in_p)       exp(+grid/sigma)
    w_ref    : ((1+g)*in_p, TO)        [base_weight^T ; scaled_spline_weight]
    o_ref    : (TN, TO)                f32 output
    slab_ref : (TN, (1+g)*in_p)        feature slab scratch (operand dtype)
    """
    x = x_ref[...].astype(jnp.float32)
    dt = slab_ref.dtype

    # Base-path features: SiLU(x).
    silu = x * (1.0 / (1.0 + jnp.exp(-x)))
    slab_ref[:, 0:in_p] = silu.astype(dt)

    # Laplacian features: exp(-|x-t|/s) = min(e^{x/s} e^{-t/s}, e^{-x/s} e^{t/s})
    # -> only two exp() per input element; exp(+-t/s) precomputed in the glue.
    xs = jnp.clip(x * inv_sigma, -60.0, 60.0)
    e_pos = jnp.exp(xs)
    e_neg = jnp.exp(-xs)
    for gi in range(grid_size):            # unrolled; grid_size is small & static
        feat = jnp.minimum(e_pos * gneg_ref[gi:gi + 1, :],
                           e_neg * gpos_ref[gi:gi + 1, :])
        off = (1 + gi) * in_p
        slab_ref[:, off:off + in_p] = feat.astype(dt)

    # One fused matmul, K = (1 + grid_size) * in_p (base + spline paths).
    o_ref[...] = jnp.dot(slab_ref[...], w_ref[...],
                         preferred_element_type=jnp.float32).astype(o_ref.dtype)


# ----------------------------------------------------------------------------
# Parameter preparation (do once, cache across forward calls)
# ----------------------------------------------------------------------------
def prepare_laplacian_kan_params(grid, base_weight, spline_weight, spline_scaler,
                                 *, sigma=1.0, operand_dtype=jnp.bfloat16):
    out_features, in_features = base_weight.shape
    grid_size = spline_weight.shape[-1]
    in_p = _round_up(in_features, 128)
    out_p = _round_up(out_features, 128)
    pad_in = in_p - in_features
    pad_out = out_p - out_features
    inv_sigma = 1.0 / float(sigma)

    # Base weight transposed + padded. Padded rows/cols are zero so padded
    # input features (which produce feat == 1) contribute nothing.
    bw = jnp.pad(base_weight.astype(jnp.float32), ((0, pad_out), (0, pad_in)))

    scaled = (spline_weight.astype(jnp.float32)
              * spline_scaler.astype(jnp.float32)[..., None])          # (out, in, g)
    scaled = jnp.pad(scaled, ((0, pad_out), (0, pad_in), (0, 0)))      # (out_p, in_p, g)
    sw_rows = jnp.transpose(scaled, (2, 1, 0)).reshape(
        grid_size * in_p, out_p)                                       # [gi*in_p + i, o]

    # Combined weight: rows = [base | node 0 | node 1 | ...], shape ((1+g)*in_p, out_p)
    w = jnp.concatenate([bw.T, sw_rows], axis=0).astype(operand_dtype)

    grid_t = jnp.pad(grid.astype(jnp.float32), ((0, pad_in), (0, 0))).T  # (g, in_p)
    g_neg = jnp.exp(-grid_t * inv_sigma)
    g_pos = jnp.exp(grid_t * inv_sigma)

    return dict(w=w, g_neg=g_neg, g_pos=g_pos,
                in_features=in_features, out_features=out_features,
                grid_size=grid_size, in_p=in_p, out_p=out_p,
                inv_sigma=inv_sigma, operand_dtype=operand_dtype)


# ----------------------------------------------------------------------------
# Forward pass
# ----------------------------------------------------------------------------
def laplacian_kan_linear_prepared(x, params, *, tile_n=256, tile_out=512):
    in_features = params["in_features"]
    out_features = params["out_features"]
    grid_size = params["grid_size"]
    in_p = params["in_p"]
    out_p = params["out_p"]
    inv_sigma = params["inv_sigma"]
    operand_dtype = params["operand_dtype"]
    w, g_neg, g_pos = params["w"], params["g_neg"], params["g_pos"]

    assert x.shape[-1] == in_features
    original_shape = x.shape
    x2 = x.reshape(-1, in_features).astype(jnp.float32)
    n = x2.shape[0]

    k_total = (1 + grid_size) * in_p
    w_bytes = jnp.dtype(operand_dtype).itemsize

    # --- tile geometry: aligned divisors, minimal padding --------------------
    tn, n_p = _pick_batch_tile(n, tile_n)
    to = _largest_aligned_divisor(out_p, tile_out, 128)

    # Small-shape megacore: ensure at least one parallel axis has >= 2 blocks.
    if n_p // tn == 1 and out_p // to == 1 and n_p >= 16 and n_p % 16 == 0:
        tn = n_p // 2

    # --- VMEM budget: shrink tiles until the block footprint fits ------------
    def vmem_est(tn_, to_):
        return (2 * tn_ * in_p * 4               # x (double-buffered, f32)
                + 4 * grid_size * in_p * 4       # g_neg/g_pos (double-buffered)
                + 2 * k_total * to_ * w_bytes    # combined weight (double-buffered)
                + 2 * tn_ * to_ * 4              # output (double-buffered, f32)
                + tn_ * k_total * w_bytes        # feature slab scratch
                + 5 * tn_ * in_p * 4             # f32 elementwise intermediates
                + tn_ * to_ * 4)                 # f32 matmul result before cast

    VMEM_BUDGET = 44 * 1024 * 1024               # fits v5e / v6e / v7x with headroom
    while vmem_est(tn, to) > VMEM_BUDGET and (to > 128 or tn > 8):
        if to > 128:
            to = _largest_aligned_divisor(out_p, to // 2, 128)
        else:
            tn = _largest_aligned_divisor(n_p, max(tn // 2, 8), 8)
    vmem_limit = int(min(max(vmem_est(tn, to) * 1.35 + (2 << 20), 16 << 20),
                         64 << 20))

    # --- pad inputs -----------------------------------------------------------
    x2 = jnp.pad(x2, ((0, n_p - n), (0, in_p - in_features)))

    kernel = functools.partial(_kan_kernel, grid_size=grid_size, in_p=in_p,
                               inv_sigma=inv_sigma)

    cost = pl.CostEstimate(
        flops=2 * n_p * out_p * k_total + 12 * n_p * in_p * (1 + grid_size),
        transcendentals=3 * n_p * in_p,
        bytes_accessed=4 * n_p * (in_p + out_p)
        + w_bytes * k_total * out_p + 8 * grid_size * in_p,
    )

    # Grid: (out tiles, batch tiles). The weight block index is constant along
    # the inner (batch) axis -> weights stay VMEM-resident; only x re-streams.
    out = pl.pallas_call(
        kernel,
        out_shape=jax.ShapeDtypeStruct((n_p, out_p), jnp.float32),
        grid_spec=pltpu.PrefetchScalarGridSpec(
            num_scalar_prefetch=0,
            grid=(out_p // to, n_p // tn),
            in_specs=[
                pl.BlockSpec((tn, in_p), lambda j, i: (i, 0)),
                pl.BlockSpec((grid_size, in_p), lambda j, i: (0, 0)),
                pl.BlockSpec((grid_size, in_p), lambda j, i: (0, 0)),
                pl.BlockSpec((k_total, to), lambda j, i: (0, j)),
            ],
            out_specs=pl.BlockSpec((tn, to), lambda j, i: (i, j)),
            scratch_shapes=[pltpu.VMEM((tn, k_total), operand_dtype)],
        ),
        compiler_params=pltpu.CompilerParams(
            dimension_semantics=("parallel", "parallel"),
            vmem_limit_bytes=vmem_limit),
        cost_estimate=cost,
    )(x2, g_neg, g_pos, w)

    out = out[:n, :out_features]
    return out.reshape(*original_shape[:-1], out_features)


def laplacian_kan_linear(x, grid, base_weight, spline_weight, spline_scaler, *,
                         sigma=1.0, tile_n=256, tile_out=512,
                         operand_dtype=jnp.bfloat16):
    """One-shot convenience API (prep + kernel). Cache prepare_* when reusing params."""
    params = prepare_laplacian_kan_params(
        grid, base_weight, spline_weight, spline_scaler,
        sigma=sigma, operand_dtype=operand_dtype)
    return laplacian_kan_linear_prepared(x, params, tile_n=tile_n, tile_out=tile_out)


# ----------------------------------------------------------------------------
# Init + reference (mirror the PyTorch module)
# ----------------------------------------------------------------------------
def _init_params(key, in_features, out_features, grid_size,
                 grid_range=(-1.0, 1.0), scale_noise=0.1, scale_base=1.0,
                 scale_spline=1.0):
    k_base, k_noise, k_scaler = jax.random.split(key, 3)

    h = (grid_range[1] - grid_range[0]) / grid_size
    grid = jnp.arange(grid_size, dtype=jnp.float32) * h + grid_range[0]
    grid = jnp.broadcast_to(grid, (in_features, grid_size))            # (in, g)

    gain = math.sqrt(2.0 / (1.0 + 5.0 * scale_base ** 2))
    bound = gain * math.sqrt(3.0 / in_features)
    base_weight = jax.random.uniform(k_base, (out_features, in_features),
                                     jnp.float32, -bound, bound)

    noise = (jax.random.uniform(k_noise, (grid_size, in_features, out_features),
                                jnp.float32) - 0.5) * scale_noise
    spline_weight = scale_spline * jnp.transpose(noise, (2, 1, 0))     # (out, in, g)

    gain_s = math.sqrt(2.0 / (1.0 + 5.0 * scale_spline ** 2))
    bound_s = gain_s * math.sqrt(3.0 / in_features)
    spline_scaler = jax.random.uniform(k_scaler, (out_features, in_features),
                                       jnp.float32, -bound_s, bound_s)

    return grid, base_weight, spline_weight, spline_scaler


def _reference(x, grid, base_weight, spline_weight, spline_scaler, sigma=1.0):
    in_features = base_weight.shape[1]
    out_features = base_weight.shape[0]
    orig = x.shape
    x2 = x.reshape(-1, in_features)
    base = jax.nn.silu(x2) @ base_weight.T
    dists = jnp.abs(x2[:, :, None] - grid[None, :, :]) / sigma
    kern = jnp.exp(-dists)                                             # (N, in, g)
    scaled = spline_weight * spline_scaler[..., None]                  # (out, in, g)
    spline = kern.reshape(x2.shape[0], -1) @ scaled.reshape(out_features, -1).T
    return (base + spline).reshape(*orig[:-1], out_features)


if __name__ == "__main__":
    in_features, out_features, grid_size = 32, 16, 5
    sigma = 1.0

    key = jax.random.PRNGKey(0)
    k_param, k_x = jax.random.split(key)
    grid, base_w, spline_w, spline_s = _init_params(
        k_param, in_features, out_features, grid_size)

    # x: (batch=2, seq=8, in_features=32) -> flattened to (16, 32) inside wrapper
    x = jax.random.normal(k_x, (2, 8, in_features), jnp.float32)

    ref = _reference(x, grid, base_w, spline_w, spline_s, sigma=sigma)

    # Strict check with f32 MXU operands.
    params_f32 = prepare_laplacian_kan_params(
        grid, base_w, spline_w, spline_s, sigma=sigma, operand_dtype=jnp.float32)
    out_f32 = jax.block_until_ready(laplacian_kan_linear_prepared(x, params_f32))
    assert out_f32.shape == (2, 8, out_features)
    assert jnp.allclose(out_f32, ref, atol=1e-4, rtol=1e-4), \
        float(jnp.max(jnp.abs(out_f32 - ref)))

    # Default fast path: bf16 MXU operands, f32 accumulation (relaxed tolerance).
    params_bf16 = prepare_laplacian_kan_params(
        grid, base_w, spline_w, spline_s, sigma=sigma)
    out_bf16 = jax.block_until_ready(laplacian_kan_linear_prepared(x, params_bf16))
    assert out_bf16.shape == (2, 8, out_features)
    assert jnp.allclose(out_bf16, ref, atol=5e-2, rtol=5e-2), \
        float(jnp.max(jnp.abs(out_bf16 - ref)))

    print("KERNEL_OK")
</pallas_src>

<mosaic_0001>
module attributes {stable_mosaic.version = 11 : i64} {
  func.func @_kan_kernel(%arg0: i32, %arg1: i32, %arg2: memref<8x128xf32, #tpu.memory_space<vmem>>, %arg3: memref<5x128xf32, #tpu.memory_space<vmem>>, %arg4: memref<5x128xf32, #tpu.memory_space<vmem>>, %arg5: memref<768x128xf32, #tpu.memory_space<vmem>>, %arg6: memref<8x128xf32, #tpu.memory_space<vmem>>, %arg7: memref<8x768xf32, #tpu.memory_space<vmem>>) attributes {dimension_semantics = [#tpu.dimension_semantics<parallel>, #tpu.dimension_semantics<parallel>], iteration_bounds = array<i64: 1, 2>, scalar_prefetch = 0 : i64, scratch_operands = 1 : i64, tpu.core_type = #tpu.core_type<tc>, window_params = [{transform_indices = @transform_0, window_bounds = array<i64: 8, 128>}, {pipeline_mode = #tpu.pipeline_mode<synchronous>, transform_indices = @transform_1, window_bounds = array<i64: 5, 128>}, {pipeline_mode = #tpu.pipeline_mode<synchronous>, transform_indices = @transform_2, window_bounds = array<i64: 5, 128>}, {transform_indices = @transform_3, window_bounds = array<i64: 768, 128>}, {transform_indices = @transform_4, window_bounds = array<i64: 8, 128>}]} {
    %c0 = arith.constant 0 : index
    %c0_0 = arith.constant 0 : index
    %0 = vector.load %arg2[%c0, %c0_0] : memref<8x128xf32, #tpu.memory_space<vmem>>, vector<8x128xf32>
    %cst = arith.constant 0.000000e+00 : f32
    %1 = vector.broadcast %cst : f32 to vector<8x128xf32>
    %2 = arith.subf %1, %0 : vector<8x128xf32>
    %3 = math.exp %2 : vector<8x128xf32>
    %cst_1 = arith.constant 1.000000e+00 : f32
    %4 = vector.broadcast %cst_1 : f32 to vector<8x128xf32>
    %5 = arith.addf %4, %3 : vector<8x128xf32>
    %cst_2 = arith.constant 1.000000e+00 : f32
    %6 = vector.broadcast %cst_2 : f32 to vector<8x128xf32>
    %7 = arith.divf %6, %5 : vector<8x128xf32>
    %8 = arith.mulf %0, %7 : vector<8x128xf32>
    %c0_3 = arith.constant 0 : index
    %c0_4 = arith.constant 0 : index
    %9 = vector.load %arg7[%c0_3, %c0_4] : memref<8x768xf32, #tpu.memory_space<vmem>>, vector<8x128xf32>
    tpu.vector_store %arg7[%c0_3, %c0_4], %8 {strides = array<i32>} : memref<8x768xf32, #tpu.memory_space<vmem>>, vector<8x128xf32>,
    %cst_5 = arith.constant 1.000000e+00 : f32
    %10 = vector.broadcast %cst_5 : f32 to vector<8x128xf32>
    %11 = arith.mulf %0, %10 : vector<8x128xf32>
    %cst_6 = arith.constant -6.000000e+01 : f32
    %cst_7 = arith.constant 6.000000e+01 : f32
    %12 = vector.broadcast %cst_6 : f32 to vector<8x128xf32>
    %13 = arith.maximumf %12, %11 : vector<8x128xf32>
    %14 = vector.broadcast %cst_7 : f32 to vector<8x128xf32>
    %15 = arith.minimumf %14, %13 : vector<8x128xf32>
    %16 = math.exp %15 : vector<8x128xf32>
    %cst_8 = arith.constant 0.000000e+00 : f32
    %17 = vector.broadcast %cst_8 : f32 to vector<8x128xf32>
    %18 = arith.subf %17, %15 : vector<8x128xf32>
    %19 = math.exp %18 : vector<8x128xf32>
    %c0_9 = arith.constant 0 : index
    %c0_10 = arith.constant 0 : index
    %20 = vector.load %arg3[%c0_9, %c0_10] : memref<5x128xf32, #tpu.memory_space<vmem>>, vector<1x128xf32>
    %21 = vector.broadcast %20 : vector<1x128xf32> to vector<8x128xf32>
    %22 = arith.mulf %16, %21 : vector<8x128xf32>
    %c0_11 = arith.constant 0 : index
    %c0_12 = arith.constant 0 : index
    %23 = vector.load %arg4[%c0_11, %c0_12] : memref<5x128xf32, #tpu.memory_space<vmem>>, vector<1x128xf32>
    %24 = vector.broadcast %23 : vector<1x128xf32> to vector<8x128xf32>
    %25 = arith.mulf %19, %24 : vector<8x128xf32>
    %26 = arith.minimumf %22, %25 : vector<8x128xf32>
    %c0_13 = arith.constant 0 : index
    %c128 = arith.constant 128 : index
    %27 = vector.load %arg7[%c0_13, %c128] : memref<8x768xf32, #tpu.memory_space<vmem>>, vector<8x128xf32>
    tpu.vector_store %arg7[%c0_13, %c128], %26 {strides = array<i32>} : memref<8x768xf32, #tpu.memory_space<vmem>>, vector<8x128xf32>,
    %c1 = arith.constant 1 : index
    %c0_14 = arith.constant 0 : index
    %28 = vector.load %arg3[%c1, %c0_14] : memref<5x128xf32, #tpu.memory_space<vmem>>, vector<1x128xf32>
    %29 = vector.broadcast %28 : vector<1x128xf32> to vector<8x128xf32>
    %30 = arith.mulf %16, %29 : vector<8x128xf32>
    %c1_15 = arith.constant 1 : index
    %c0_16 = arith.constant 0 : index
    %31 = vector.load %arg4[%c1_15, %c0_16] : memref<5x128xf32, #tpu.memory_space<vmem>>, vector<1x128xf32>
    %32 = vector.broadcast %31 : vector<1x128xf32> to vector<8x128xf32>
    %33 = arith.mulf %19, %32 : vector<8x128xf32>
    %34 = arith.minimumf %30, %33 : vector<8x128xf32>
    %c0_17 = arith.constant 0 : index
    %c256 = arith.constant 256 : index
    %35 = vector.load %arg7[%c0_17, %c256] : memref<8x768xf32, #tpu.memory_space<vmem>>, vector<8x128xf32>
    tpu.vector_store %arg7[%c0_17, %c256], %34 {strides = array<i32>} : memref<8x768xf32, #tpu.memory_space<vmem>>, vector<8x128xf32>,
    %c2 = arith.constant 2 : index
    %c0_18 = arith.constant 0 : index
    %36 = vector.load %arg3[%c2, %c0_18] : memref<5x128xf32, #tpu.memory_space<vmem>>, vector<1x128xf32>
    %37 = vector.broadcast %36 : vector<1x128xf32> to vector<8x128xf32>
    %38 = arith.mulf %16, %37 : vector<8x128xf32>
    %c2_19 = arith.constant 2 : index
    %c0_20 = arith.constant 0 : index
    %39 = vector.load %arg4[%c2_19, %c0_20] : memref<5x128xf32, #tpu.memory_space<vmem>>, vector<1x128xf32>
    %40 = vector.broadcast %39 : vector<1x128xf32> to vector<8x128xf32>
    %41 = arith.mulf %19, %40 : vector<8x128xf32>
    %42 = arith.minimumf %38, %41 : vector<8x128xf32>
    %c0_21 = arith.constant 0 : index
    %c384 = arith.constant 384 : index
    %43 = vector.load %arg7[%c0_21, %c384] : memref<8x768xf32, #tpu.memory_space<vmem>>, vector<8x128xf32>
    tpu.vector_store %arg7[%c0_21, %c384], %42 {strides = array<i32>} : memref<8x768xf32, #tpu.memory_space<vmem>>, vector<8x128xf32>,
    %c3 = arith.constant 3 : index
    %c0_22 = arith.constant 0 : index
    %44 = vector.load %arg3[%c3, %c0_22] : memref<5x128xf32, #tpu.memory_space<vmem>>, vector<1x128xf32>
    %45 = vector.broadcast %44 : vector<1x128xf32> to vector<8x128xf32>
    %46 = arith.mulf %16, %45 : vector<8x128xf32>
    %c3_23 = arith.constant 3 : index
    %c0_24 = arith.constant 0 : index
    %47 = vector.load %arg4[%c3_23, %c0_24] : memref<5x128xf32, #tpu.memory_space<vmem>>, vector<1x128xf32>
    %48 = vector.broadcast %47 : vector<1x128xf32> to vector<8x128xf32>
    %49 = arith.mulf %19, %48 : vector<8x128xf32>
    %50 = arith.minimumf %46, %49 : vector<8x128xf32>
    %c0_25 = arith.constant 0 : index
    %c512 = arith.constant 512 : index
    %51 = vector.load %arg7[%c0_25, %c512] : memref<8x768xf32, #tpu.memory_space<vmem>>, vector<8x128xf32>
    tpu.vector_store %arg7[%c0_25, %c512], %50 {strides = array<i32>} : memref<8x768xf32, #tpu.memory_space<vmem>>, vector<8x128xf32>,
    %c4 = arith.constant 4 : index
    %c0_26 = arith.constant 0 : index
    %52 = vector.load %arg3[%c4, %c0_26] : memref<5x128xf32, #tpu.memory_space<vmem>>, vector<1x128xf32>
    %53 = vector.broadcast %52 : vector<1x128xf32> to vector<8x128xf32>
    %54 = arith.mulf %16, %53 : vector<8x128xf32>
    %c4_27 = arith.constant 4 : index
    %c0_28 = arith.constant 0 : index
    %55 = vector.load %arg4[%c4_27, %c0_28] : memref<5x128xf32, #tpu.memory_space<vmem>>, vector<1x128xf32>
    %56 = vector.broadcast %55 : vector<1x128xf32> to vector<8x128xf32>
    %57 = arith.mulf %19, %56 : vector<8x128xf32>
    %58 = arith.minimumf %54, %57 : vector<8x128xf32>
    %c0_29 = arith.constant 0 : index
    %c640 = arith.constant 640 : index
    %59 = vector.load %arg7[%c0_29, %c640] : memref<8x768xf32, #tpu.memory_space<vmem>>, vector<8x128xf32>
    tpu.vector_store %arg7[%c0_29, %c640], %58 {strides = array<i32>} : memref<8x768xf32, #tpu.memory_space<vmem>>, vector<8x128xf32>,
    %c0_30 = arith.constant 0 : index
    %c0_31 = arith.constant 0 : index
    %60 = vector.load %arg7[%c0_30, %c0_31] : memref<8x768xf32, #tpu.memory_space<vmem>>, vector<8x768xf32>
    %c0_32 = arith.constant 0 : index
    %c0_33 = arith.constant 0 : index
    %61 = vector.load %arg5[%c0_32, %c0_33] : memref<768x128xf32, #tpu.memory_space<vmem>>, vector<768x128xf32>
    %cst_34 = arith.constant dense<0.000000e+00> : vector<8x128xf32>
    %62 = tpu.matmul %60, %61, %cst_34 {dimension_numbers = #tpu.dot_dimension_numbers<[1], [0], [0], [1], [0, 0, 1, 1], [], []>} : vector<8x768xf32>, vector<768x128xf32>, vector<8x128xf32> -> vector<8x128xf32>
    %c0_35 = arith.constant 0 : index
    %c0_36 = arith.constant 0 : index
    %63 = vector.load %arg6[%c0_35, %c0_36] : memref<8x128xf32, #tpu.memory_space<vmem>>, vector<8x128xf32>
    tpu.vector_store %arg6[%c0_35, %c0_36], %62 {strides = array<i32>} : memref<8x128xf32, #tpu.memory_space<vmem>>, vector<8x128xf32>,
    return
  }
  func.func @transform_0(%arg0: i32, %arg1: i32) -> (i32, i32) {
    %c0_i32 = arith.constant 0 : i32
    %c0_i32_0 = arith.constant 0 : i32
    return %arg1, %c0_i32 : i32, i32
  }
  func.func @transform_1(%arg0: i32, %arg1: i32) -> (i32, i32) {
    %c0_i32 = arith.constant 0 : i32
    %c0_i32_0 = arith.constant 0 : i32
    %c0_i32_1 = arith.constant 0 : i32
    return %c0_i32, %c0_i32_0 : i32, i32
  }
  func.func @transform_2(%arg0: i32, %arg1: i32) -> (i32, i32) {
    %c0_i32 = arith.constant 0 : i32
    %c0_i32_0 = arith.constant 0 : i32
    %c0_i32_1 = arith.constant 0 : i32
    return %c0_i32, %c0_i32_0 : i32, i32
  }
  func.func @transform_3(%arg0: i32, %arg1: i32) -> (i32, i32) {
    %c0_i32 = arith.constant 0 : i32
    %c0_i32_0 = arith.constant 0 : i32
    return %c0_i32, %arg0 : i32, i32
  }
  func.func @transform_4(%arg0: i32, %arg1: i32) -> (i32, i32) {
    %c0_i32 = arith.constant 0 : i32
    return %arg1, %arg0 : i32, i32
  }
}

</mosaic_0001>

<bundles_post_ra>
// kernel: tpu_custom_call.1
= control target key start
LH: loop header
LB: loop body
LE: loop exit
PB: predicated region body
PF: predicated region fallthrough
CT: control target
= control target key end

     0   :  { %9 = vsyncpa [#allocation4], 0  ;;  %s1668_s0 = inlined_call_operand.hbm [shape: f32[16,128], index: 0, kind: input, shape index: {}]   ;;  %s1669_s1 = inlined_call_operand.hbm [shape: f32[5,128], index: 1, kind: input, shape index: {}]   ;;  %s1670_s2 = inlined_call_operand.hbm [shape: f32[5,128], index: 2, kind: input, shape index: {}]   ;;  %s1671_s3 = inlined_call_operand.hbm [shape: f32[768,128], index: 3, kind: input, shape index: {}]   ;;  %s1672_s4 = inlined_call_operand.hbm [shape: f32[16,128], index: 4, kind: output, shape index: {}]  }
   0x1   :  { %11 = vsyncpa [#allocation4 + $0x1], 0 }
   0x2   :  { %12 = vsyncpa [#allocation7], 0 }
   0x3   :  { %13 = vsyncpa [#allocation10], 0 }
   0x4   :  { %14 = vsyncpa [#allocation5], 0 }
   0x5   :  { %16 = vsyncpa [#allocation5 + $0x1], 0  ;;  %s1370_s15 = smov 0   ;;  %s1372_s16 = smov 0  }
   0x6   :  { %s1374_s17 = smov 0   ;;  %s1376_s18 = smov 0  }
   0x7   :  { %s1378_s19 = smov 0   ;;  %s1380_s20 = smov 0  }
   0x8 LB: > { %s798_s21 = sadd.s32 4294967295, %s1336_s20   ;;  %s799_s22 = sadd.s32 4294967294, %s1336_s20   ;;  %s1336_s20 = sphi %s1380_s20, %s22_s20   ;;  %s1332_s19 = sphi %s1378_s19, %s1696_s19   ;;  %s1328_s18 = sphi %s1376_s18, %s1695_s18   ;;  %s1324_s17 = sphi %s1374_s17, %s1694_s17   ;;  %s1320_s16 = sphi %s1372_s16, %s1693_s16   ;;  %s1316_s15 = sphi %s1370_s15, %s1692_s15  }
   0x9   : > { %p54_p0 = scmp.ne.s32.totalorder %s1320_s16, %s1316_s15  ;;  %p1404_p1 = scmp.eq.s32.totalorder %s798_s21, 0 }
   0xa   : > { %p1408_p2 = scmp.eq.s32.totalorder %s798_s21, 1  ;;  %p154_p3 = scmp.eq.s32.totalorder %s799_s22, 1 }
   0xb   : > { %s1677_s23 = scalar_select %p1404_p1, 1, 0 }
   0xc   : > { %s1678_s24 = scalar_select %p1408_p2, 1, 0 }
   0xd   : > { %p1414_p4 = por %p1404_p1, %p54_p0  ;;  %p800_p5 = scmp.ge.s32.totalorder %s1336_s20, 1 }
   0xe   : > { %p1419_p6 = por %p154_p3, %p54_p0  ;;  %p161_p7 = scmp.lt.s32.totalorder %s1336_s20, 3 }
   0xf   : > { %s1679_s25 = scalar_select %p1414_p4, 1, 0 }
  0x10   : > { %s1680_s26 = scalar_select %p1419_p6, 1, 0 }
  0x11   : > { %p1424_p8 = pnand %p800_p5, %p161_p7  ;;  %s1338_s28 = smov [#allocation6]  }
  0x12   : > { %s174_s29 = sshll.u32 %s1338_s28, 4  ;;  %s1339_s30 = smov [#allocation8]   ;;  %s175_s29 = int_to_ptr.vmem [resolvable:$true] %s174_s29 }
  0x13   : > { %s1681_s27 = scalar_select %p1424_p8, 1, 0 }
  0x14   : > { %p1045_p10 = pneg %p1424_p8  ;;  %s185_s5 = sshll.u32 %s1339_s30, 4  ;;  %s1437_s5 = int_to_ptr.vmem [resolvable:$true] %s185_s5 }
  0x15   : > { %s1340_s7 = smov [#allocation9]   ;;  %s1132_s11 = scalar_lea.hbm %s1669_s1, 128 }
  0x16   : > { %p1433_p11 = pnand %p1045_p10, %p1404_p1  ;;  %s197_s8 = sshll.u32 %s1340_s7, 4  ;;  %s1439_s8 = int_to_ptr.vmem [resolvable:$true] %s197_s8 }
  0x17   : > { %p1133_p12 = scmp.ne.s32.totalorder %s1669_s1, %s1132_s11  ;;  %p1139_p5 = scmp.lt.u32.totalorder %s1132_s11, %s1669_s1 }
  0x18   : > { %p1449_p13 = pneg %p1433_p11 }
  0x1a   : > { %p1135_p0 = pnand %p1449_p13, %p1133_p12 }
  0x1c   : > { %p1136_p3 = pneg %p1135_p0 }
  0x1e   : > { %p1141_p7 = pnand %p1139_p5, %p1136_p3 }
  0x20   : > { %1144 = shalt.err (!%p1141_p7)
}
  0x21   : > { %s1145_s28 = scalar_lea.vmem %s175_s29, 128  ;;  %p1153_p1 = scmp.lt.s32.totalorder %s175_s29, %s175_s29 }
  0x22   : > { %p1146_p10 = scmp.ne.s32.totalorder %s175_s29, %s1145_s28  ;;  %p1154_p4 = scmp.lt.s32.totalorder %s1145_s28, %s1145_s28 }
  0x24   : > { %p1148_p9 = pnand %p1146_p10, %p1449_p13  ;;  %p1155_p8 = por %p1154_p4, %p1153_p1 }
  0x26   : > { %p1149_p6 = pneg %p1148_p9 }
  0x28   : > { %p1156_p2 = pnand %p1155_p8, %p1149_p6 }
  0x2a   : > { %1159 = shalt.err (!%p1156_p2)
}
  0x2b   : > { %1048 = dma.hbm_to_vmem [thread:$0]  (!%p1433_p11), %s1669_s1, 128, %s175_s29, [#allocation7]  }
  0x2c   : > { %s1160_s11 = scalar_lea.hbm %s1670_s2, 128 }
  0x2d   : > { %p1161_p9 = scmp.ne.s32.totalorder %s1670_s2, %s1160_s11  ;;  %p1167_p2 = scmp.lt.u32.totalorder %s1160_s11, %s1670_s2 }
  0x2f   : > { %p1163_p12 = pnand %p1161_p9, %p1449_p13 }
  0x31   : > { %p1164_p1 = pneg %p1163_p12 }
  0x33   : > { %p1169_p4 = pnand %p1167_p2, %p1164_p1 }
  0x35   : > { %1172 = shalt.err (!%p1169_p4)
}
  0x36   : > { %s1173_s29 = scalar_lea.vmem %s1437_s5, 128  ;;  %p1181_p3 = scmp.lt.s32.totalorder %s1437_s5, %s1437_s5 }
  0x37   : > { %p1174_p6 = scmp.ne.s32.totalorder %s1437_s5, %s1173_s29  ;;  %p1182_p5 = scmp.lt.s32.totalorder %s1173_s29, %s1173_s29 }
  0x39   : > { %p1176_p8 = pnand %p1174_p6, %p1449_p13  ;;  %p1183_p7 = por %p1182_p5, %p1181_p3 }
  0x3b   : > { %p1177_p0 = pneg %p1176_p8 }
  0x3d   : > { %p1184_p10 = pnand %p1183_p7, %p1177_p0 }
  0x3f   : > { %1187 = shalt.err (!%p1184_p10)
}
  0x40   : > { %1051 = dma.hbm_to_vmem [thread:$0]  (!%p1433_p11), %s1670_s2, 128, %s1437_s5, [#allocation7]  }
  0x41   : > { %s1188_s10 = scalar_lea.hbm %s1671_s3, 12288 }
  0x42   : > { %p1189_p9 = scmp.ne.s32.totalorder %s1671_s3, %s1188_s10  ;;  %p1195_p2 = scmp.lt.u32.totalorder %s1188_s10, %s1671_s3 }
  0x44   : > { %p1191_p12 = pnand %p1189_p9, %p1449_p13 }
  0x46   : > { %p1192_p1 = pneg %p1191_p12 }
  0x48   : > { %p1197_p4 = pnand %p1195_p2, %p1192_p1 }
  0x4a   : > { %1200 = shalt.err (!%p1197_p4)
}
  0x4b   : > { %s1201_s5 = scalar_lea.vmem %s1439_s8, 12288  ;;  %p1209_p3 = scmp.lt.s32.totalorder %s1439_s8, %s1439_s8 }
  0x4c   : > { %p1202_p6 = scmp.ne.s32.totalorder %s1439_s8, %s1201_s5  ;;  %p1210_p5 = scmp.lt.s32.totalorder %s1201_s5, %s1201_s5 }
  0x4e   : > { %p1204_p8 = pnand %p1202_p6, %p1449_p13  ;;  %p1211_p7 = por %p1210_p5, %p1209_p3 }
  0x50   : > { %p1205_p0 = pneg %p1204_p8 }
  0x52   : > { %p1212_p10 = pnand %p1211_p7, %p1205_p0 }
  0x54   : > { %1215 = shalt.err (!%p1212_p10)
}
  0x55   : > { %s1341_s22 = smov 128   ;;  %s1342_s14 = smov 8  }
  0x56   : > { %1054 = dma.hbm_to_vmem [thread:$0]  (!%p1433_p11), %s1671_s3, 12288, %s1439_s8, [#allocation10], %s1341_s22, %s1341_s22, %s1342_s14  }
  0x57   : > { %s41_s30 = sadd.s32 1, %s1324_s17  ;;  %s31_s7 = sadd.s32 1, %s1332_s19 }
  0x58   : > { %p48_p13 = scmp.ne.s32.totalorder %s1324_s17, %s1320_s16  ;;  %p32_p9 = scmp.ge.s32.totalorder %s31_s7, 2 }
  0x59   : > { %p49_p12 = scmp.eq.s32.totalorder %s1336_s20, 0  ;;  %p1684_p1 = scmp.ne.s32.totalorder %s1678_s24, 0 }
  0x5a   : > { %p1066_p4 = scmp.lt.s32.totalorder %s1336_s20, 2  ;;  %s1698_s7 = smov (%p32_p9, %s31_s7), 0 }
  0x5b   : > { %p1518_p2 = por %p1684_p1, %p48_p13  ;;  %p50_p6 = por %p49_p12, %p48_p13 }
  0x5c   : > { %s211_s6 = sand.u32 1, %s1324_s17   ;;  %s38_s10 = ssub.s32 %s1332_s19, %s1698_s7 }
  0x5d   : > { %p39_p8 = scmp.eq.s32.totalorder %s38_s10, 0  ;;  %s805_s8 = sshll.u32 %s211_s6, 3 }
  0x5e   : > { %s806_s11 = sshll.u32 %s1332_s19, 7  ;;  %s215_s5 = scalar_lea.vmem [#allocation3], %s805_s8 }
  0x5f   : > { %s1530_s12 = scalar_select %p39_p8, %s1324_s17, %s41_s30  }
  0x60   : > { %s1535_s24 = scalar_lea.hbm %s1668_s0, %s806_s11  ;;  %s222_s22 = sshll.u32 %s215_s5, 4  ;;  %s1537_s22 = int_to_ptr.vmem [resolvable:$true] %s222_s22 }
  0x61   : > { %p1541_p11 = pnand %p1066_p4, %p50_p6  ;;  %s212_s29 = scalar_lea.sflag [#allocation4], %s211_s6 }
  0x62   : > { %s1216_s28 = scalar_lea.hbm %s1535_s24, 128  ;;  %s1221_s8 = scalar_lea.hbm %s1668_s0, 256 }
  0x63   : > { %p1217_p0 = scmp.ne.s32.totalorder %s1535_s24, %s1216_s28  ;;  %p1218_p3 = pneg %p1541_p11 }
  0x64   : > { %p1222_p10 = scmp.lt.u32.totalorder %s1535_s24, %s1668_s0  ;;  %p1223_p13 = scmp.lt.u32.totalorder %s1221_s8, %s1216_s28 }
  0x65   : > { %p1219_p5 = pnand %p1218_p3, %p1217_p0  ;;  %p1225_p12 = scmp.lt.u32.totalorder %s1216_s28, %s1535_s24 }
  0x66   : > { %p1224_p9 = por %p1223_p13, %p1222_p10 }
  0x67   : > { %p1220_p7 = pneg %p1219_p5 }
  0x68   : > { %p1226_p1 = por %p1225_p12, %p1224_p9 }
  0x6a   : > { %p1227_p4 = pnand %p1226_p1, %p1220_p7 }
  0x6c   : > { %1230 = shalt.err (!%p1227_p4)
}
  0x6d   : > { %s1231_s6 = scalar_lea.vmem %s1537_s22, 128  ;;  %s1343_s21 = smov [#allocation3]  }
  0x6e   : > { %p1232_p6 = scmp.ne.s32.totalorder %s1537_s22, %s1231_s6  ;;  %s1236_s5 = sshll.u32 %s1343_s21, 4  ;;  %s1237_s5 = int_to_ptr.vmem [resolvable:$false] %s1236_s5 }
  0x6f   : > { %s1238_s30 = scalar_lea.vmem %s1237_s5, 256  ;;  %p1239_p5 = scmp.lt.s32.totalorder %s1537_s22, %s1237_s5 }
  0x70   : > { %p1234_p8 = pnand %p1232_p6, %p1218_p3  ;;  %p1240_p10 = scmp.lt.s32.totalorder %s1238_s30, %s1231_s6 }
  0x72   : > { %p1235_p0 = pneg %p1234_p8  ;;  %p1241_p13 = por %p1240_p10, %p1239_p5 }
  0x74   : > { %p1242_p9 = pnand %p1241_p13, %p1235_p0 }
  0x76   : > { %1245 = shalt.err (!%p1242_p9)
}
  0x77   : > { %1058 = dma.hbm_to_vmem [thread:$0]  (!%p1541_p11), %s1535_s24, 128, %s1537_s22, %s212_s29  }
  0x78   : > { %p1687_p7 = scmp.ne.s32.totalorder %s1681_s27, 0 }
  0x79   : > { %s1573_s28 = sand.u32 (!%p1687_p7), 1, %s1320_s16   ;;  %p1688_p3 = scmp.ne.s32.totalorder (!%p1687_p7), %s1679_s25, 0 }
  0x7a   : > { %231 = sbr.rel (%p1687_p7) target bundleno = 450 (0x1c2), region = 36  ;;  %s808_s10 = sshll.u32 (!%p1687_p7), %s1573_s28, 3 }
  0x7b   : > { %s234_s8 = scalar_lea.sflag (!%p1687_p7), [#allocation4], %s1573_s28  ;;  %s1579_s11 = scalar_lea.vmem (!%p1687_p7), [#allocation3], %s808_s10 }
  0x81   : > { %1299 = dma.done.wait (%p1688_p3), %s234_s8, 128  }
  0x82   : > { %1301 = vsyncadd (%p1688_p3), %s234_s8, 4294967168  ;;  %p1689_p11 = scmp.ne.s32.totalorder %s1677_s23, 0 }
  0x84   : > { %1303 = dma.done.wait (%p1689_p11), [#allocation7], 256  }
  0x85   : > { %1305 = vsyncadd (%p1689_p11), [#allocation7], 4294967040 }
  0x86   : > { %1307 = dma.done.wait (%p1689_p11), [#allocation10], 12288  }
  0x87   : > { %1309 = vsyncadd (%p1689_p11), [#allocation10], 4294955008  ;;  %v382_v0 = vld [vmem:[#allocation9 + $0x80] sm:$0xff]  ;;  %v383_v1 = vld [vmem:[#allocation9 + $0x88] sm:$0xff]  ;;  %s825_s23 = sshll.u32 %s1328_s18, 7  ;;  %s273_s25 = scalar_lea.vmem [#allocation11], %s808_s10 }
  0x88   : > { %v414_v2 = vld [vmem:[#allocation9 + $0x180] sm:$0xff]  ;;  %v933_v3 = vpack.c.bf16 %v383_v1, %v382_v0  ;;  %v415_v4 = vld [vmem:[#allocation9 + $0x188] sm:$0xff]  ;;  %v384_v11 = vld [vmem:[#allocation9 + $0x90] sm:$0xff]  ;;  %s688_s27 = sshll.u32 %s273_s25, 4  ;;  %s1619_s14 = scalar_lea.hbm %s1672_s4, %s825_s23  ;;  %s1621_s27 = int_to_ptr.vmem [resolvable:$true] %s688_s27 }
  0x89   : > { %v366_v5 = vld [vmem:[#allocation9] sm:$0xff]  ;;  %v367_v6 = vld [vmem:[#allocation9 + $0x8] sm:$0xff]  ;;  %v965_v7 = vpack.c.bf16 %v415_v4, %v414_v2  ;;  %v385_v13 = vld [vmem:[#allocation9 + $0x98] sm:$0xff]  ;;  %s674_s29 = scalar_lea.sflag [#allocation5], %s1573_s28  ;;  %s1246_s13 = scalar_lea.vmem %s1621_s27, 128 }
  0x8a   : > { %v935_v8 = vpack.c.bf16 %v367_v6, %v366_v5  ;;  %v398_v9 = vld [vmem:[#allocation9 + $0x100] sm:$0xff]  ;;  %v399_v10 = vld [vmem:[#allocation9 + $0x108] sm:$0xff]  ;;  %934 = vmatprep.subr.bf16.mxu0 %v933_v3  ;;  %v416_v14 = vld [vmem:[#allocation9 + $0x190] sm:$0xff]  ;;  %v937_v16 = vpack.c.bf16 %v385_v13, %v384_v11  ;;  %p1247_p12 = scmp.ne.s32.totalorder %s1621_s27, %s1246_s13  ;;  %s1344_s18 = smov [#allocation11]  }
  0x8b   : > { %v967_v12 = vpack.c.bf16 %v399_v10, %v398_v9  ;;  %v417_v15 = vld [vmem:[#allocation9 + $0x198] sm:$0xff]  ;;  %966 = vmatprep.subr.bf16.mxu1 %v965_v7  ;;  %v368_v18 = vld [vmem:[#allocation9 + $0x10] sm:$0xff]  ;;  %v386_v23 = vld [vmem:[#allocation9 + $0xa0] sm:$0xff]  ;;  %s1250_s6 = sshll.u32 %s1344_s18, 4  ;;  %s1251_s6 = int_to_ptr.vmem [resolvable:$false] %s1250_s6 }
  0x8c   : > { %936 = vmatpush3.bf16.msra.mxu0 %v935_v8  ;;  %v969_v17 = vpack.c.bf16 %v417_v15, %v416_v14  ;;  %v369_v19 = vld [vmem:[#allocation9 + $0x18] sm:$0xff]  ;;  %v400_v20 = vld [vmem:[#allocation9 + $0x110] sm:$0xff]  ;;  %v387_v24 = vld [vmem:[#allocation9 + $0xa8] sm:$0xff]  ;;  %p1248_p1 = pnand %p1247_p12, %p1518_p2  ;;  %s1252_s21 = scalar_lea.vmem %s1251_s6, 256 }
  0x8d   : > { %968 = vmatpush3.bf16.msra.mxu1 %v967_v12  ;;  %v939_v21 = vpack.c.bf16 %v369_v19, %v368_v18  ;;  %v401_v22 = vld [vmem:[#allocation9 + $0x118] sm:$0xff]  ;;  %938 = vmatprep.subr.bf16.mxu0 %v937_v16  ;;  %v941_v26 = vpack.c.bf16 %v387_v24, %v386_v23  ;;  %v418_v27 = vld [vmem:[#allocation9 + $0x1a0] sm:$0xff]  ;;  %v419_v28 = vld [vmem:[#allocation9 + $0x1a8] sm:$0xff]  ;;  %p1253_p6 = scmp.lt.s32.totalorder %s1621_s27, %s1251_s6  ;;  %p1254_p8 = scmp.lt.s32.totalorder %s1252_s21, %s1246_s13 }
  0x8e   : > { %970 = vmatprep.subr.bf16.mxu1 %v969_v17  ;;  %v971_v25 = vpack.c.bf16 %v401_v22, %v400_v20  ;;  %v370_v29 = vld [vmem:[#allocation9 + $0x20] sm:$0xff]  ;;  %v973_v30 = vpack.c.bf16 %v419_v28, %v418_v27  ;;  %v371_v31 = vld [vmem:[#allocation9 + $0x28] sm:$0xff]  ;;  %v388_v35 = vld [vmem:[#allocation9 + $0xb0] sm:$0xff]  ;;  %p1249_p4 = pneg %p1248_p1 }
  0x8f   : > { %v402_v32 = vld [vmem:[#allocation9 + $0x120] sm:$0xff]  ;;  %v403_v33 = vld [vmem:[#allocation9 + $0x128] sm:$0xff]  ;;  %v943_v34 = vpack.c.bf16 %v371_v31, %v370_v29  ;;  %v389_v36 = vld [vmem:[#allocation9 + $0xb8] sm:$0xff]  ;;  %p1255_p0 = por %p1254_p8, %p1253_p6 }
  0x90   : > { %940 = vmatpush3.bf16.msra.mxu0 %v939_v21  ;;  %v420_v37 = vld [vmem:[#allocation9 + $0x1b0] sm:$0xff]  ;;  %v975_v38 = vpack.c.bf16 %v403_v33, %v402_v32  ;;  %v945_v39 = vpack.c.bf16 %v389_v36, %v388_v35  ;;  %v421_v40 = vld [vmem:[#allocation9 + $0x1b8] sm:$0xff]  ;;  %v390_v46 = vld [vmem:[#allocation9 + $0xc0] sm:$0xff] }
  0x91   : > { %972 = vmatpush3.bf16.msra.mxu1 %v971_v25  ;;  %942 = vmatprep.subr.bf16.mxu0 %v941_v26  ;;  %v372_v41 = vld [vmem:[#allocation9 + $0x30] sm:$0xff]  ;;  %v373_v42 = vld [vmem:[#allocation9 + $0x38] sm:$0xff]  ;;  %v977_v43 = vpack.c.bf16 %v421_v40, %v420_v37  ;;  %v391_v47 = vld [vmem:[#allocation9 + $0xc8] sm:$0xff]  ;;  %p1256_p5 = pnand %p1255_p0, %p1249_p4 }
  0x92   : > { %974 = vmatprep.subr.bf16.mxu1 %v973_v30  ;;  %v404_v44 = vld [vmem:[#allocation9 + $0x130] sm:$0xff]  ;;  %v405_v45 = vld [vmem:[#allocation9 + $0x138] sm:$0xff]  ;;  %v422_v48 = vld [vmem:[#allocation9 + $0x1c0] sm:$0xff]  ;;  %v947_v50 = vpack.c.bf16 %v373_v42, %v372_v41  ;;  %v949_v52 = vpack.c.bf16 %v391_v47, %v390_v46 }
  0x93   : > { %v423_v49 = vld [vmem:[#allocation9 + $0x1c8] sm:$0xff]  ;;  %v979_v51 = vpack.c.bf16 %v405_v45, %v404_v44  ;;  %v374_v53 = vld [vmem:[#allocation9 + $0x40] sm:$0xff]  ;;  %v392_v58 = vld [vmem:[#allocation9 + $0xd0] sm:$0xff] }
  0x94   : > { %944 = vmatpush3.bf16.msra.mxu0 %v943_v34  ;;  %v375_v54 = vld [vmem:[#allocation9 + $0x48] sm:$0xff]  ;;  %v406_v55 = vld [vmem:[#allocation9 + $0x140] sm:$0xff]  ;;  %v981_v56 = vpack.c.bf16 %v423_v49, %v422_v48  ;;  %v393_v59 = vld [vmem:[#allocation9 + $0xd8] sm:$0xff] }
  0x95   : > { %976 = vmatpush3.bf16.msra.mxu1 %v975_v38  ;;  %946 = vmatprep.subr.bf16.mxu0 %v945_v39  ;;  %v407_v57 = vld [vmem:[#allocation9 + $0x148] sm:$0xff]  ;;  %v424_v60 = vld [vmem:[#allocation9 + $0x1d0] sm:$0xff]  ;;  %v425_v61 = vld [vmem:[#allocation9 + $0x1d8] sm:$0xff]  ;;  %v951_v62 = vpack.c.bf16 %v375_v54, %v374_v53  ;;  %v953_v0 = vpack.c.bf16 %v393_v59, %v392_v58 }
  0x96   : > { %978 = vmatprep.subr.bf16.mxu1 %v977_v43  ;;  %v983_v63 = vpack.c.bf16 %v407_v57, %v406_v55  ;;  %v376_v1 = vld [vmem:[#allocation9 + $0x50] sm:$0xff]  ;;  %v377_v2 = vld [vmem:[#allocation9 + $0x58] sm:$0xff]  ;;  %v985_v4 = vpack.c.bf16 %v425_v61, %v424_v60  ;;  %v394_v6 = vld [vmem:[#allocation9 + $0xe0] sm:$0xff] }
  0x97   : > { %v408_v3 = vld [vmem:[#allocation9 + $0x150] sm:$0xff]  ;;  %v409_v5 = vld [vmem:[#allocation9 + $0x158] sm:$0xff]  ;;  %v395_v7 = vld [vmem:[#allocation9 + $0xe8] sm:$0xff]  ;;  %v955_v10 = vpack.c.bf16 %v377_v2, %v376_v1 }
  0x98   : > { %948 = vmatpush3.bf16.msra.mxu0 %v947_v50  ;;  %v426_v8 = vld [vmem:[#allocation9 + $0x1e0] sm:$0xff]  ;;  %v427_v9 = vld [vmem:[#allocation9 + $0x1e8] sm:$0xff]  ;;  %v987_v12 = vpack.c.bf16 %v409_v5, %v408_v3  ;;  %v957_v13 = vpack.c.bf16 %v395_v7, %v394_v6  ;;  %v396_v19 = vld [vmem:[#allocation9 + $0xf0] sm:$0xff] }
  0x99   : > { %980 = vmatpush3.bf16.msra.mxu1 %v979_v51  ;;  %950 = vmatprep.subr.bf16.mxu0 %v949_v52  ;;  %v378_v11 = vld [vmem:[#allocation9 + $0x60] sm:$0xff]  ;;  %v379_v14 = vld [vmem:[#allocation9 + $0x68] sm:$0xff]  ;;  %v989_v17 = vpack.c.bf16 %v427_v9, %v426_v8  ;;  %v397_v20 = vld [vmem:[#allocation9 + $0xf8] sm:$0xff] }
  0x9a   : > { %982 = vmatprep.subr.bf16.mxu1 %v981_v56  ;;  %v410_v15 = vld [vmem:[#allocation9 + $0x160] sm:$0xff]  ;;  %v411_v18 = vld [vmem:[#allocation9 + $0x168] sm:$0xff]  ;;  %v428_v23 = vld [vmem:[#allocation9 + $0x1f0] sm:$0xff]  ;;  %v959_v25 = vpack.c.bf16 %v379_v14, %v378_v11  ;;  %v961_v30 = vpack.c.bf16 %v397_v20, %v396_v19 }
  0x9b   : > { %v1594_v16 = vld [vmem:[%s1579_s11] sm:$0xff]  ;;  %v429_v24 = vld [vmem:[#allocation9 + $0x1f8] sm:$0xff]  ;;  %v991_v29 = vpack.c.bf16 %v411_v18, %v410_v15  ;;  %v380_v31 = vld [vmem:[#allocation9 + $0x70] sm:$0xff] }
  0x9c   : > { %952 = vmatpush3.bf16.msra.mxu0 %v951_v62  ;;  %v813_v21 = vclamps-f32 %v1594_v16, 60.0  ;;  %v275_v22 = vsub.f32 0.0, %v1594_v16  ;;  %v381_v32 = vld [vmem:[#allocation9 + $0x78] sm:$0xff]  ;;  %v412_v33 = vld [vmem:[#allocation9 + $0x170] sm:$0xff]  ;;  %v993_v34 = vpack.c.bf16 %v429_v24, %v428_v23  ;;  %v446_v37 = vld [vmem:[#allocation9 + $0x280] sm:$0xff] }
  0x9d   : > { %984 = vmatpush3.bf16.msra.mxu1 %v983_v63  ;;  %954 = vmatprep.subr.bf16.mxu0 %v953_v0  ;;  %v413_v35 = vld [vmem:[#allocation9 + $0x178] sm:$0xff]  ;;  %v447_v38 = vld [vmem:[#allocation9 + $0x288] sm:$0xff]  ;;  %v963_v39 = vpack.c.bf16 %v381_v32, %v380_v31  ;;  %v814_v42 = vld [vmem:[#allocation6] ss:$0 sm:$0xff] }
  0x9e   : > { %986 = vmatprep.subr.bf16.mxu1 %v985_v4  ;;  %v285_v26 = vmul.f32 1.442695, %v813_v21  ;;  %v287_v27 = vsub.f32 0.0, %v813_v21  ;;  %v276_v28 = vmul.f32 1.442695, %v275_v22  ;;  %v995_v40 = vpack.c.bf16 %v413_v35, %v412_v33  ;;  %v430_v1 = vld [vmem:[#allocation9 + $0x200] sm:$0xff] }
  0x9f   : > { %v997_v41 = vpack.c.bf16 %v447_v38, %v446_v37  ;;  %v818_v43 = vld [vmem:[#allocation6 + $0x2] ss:$0 sm:$0xff]  ;;  %v816_v44 = vld [vmem:[#allocation6 + $0x1] ss:$0 sm:$0xff]  ;;  %v815_v46 = vld [vmem:[#allocation8] ss:$0 sm:$0xff] }
  0xa0   : > { %956 = vmatpush3.bf16.msra.mxu0 %v955_v10  ;;  %1124 = vpow2.f32 %v285_v26  ;;  %v288_v36 = vmul.f32 1.442695, %v287_v27  ;;  %v819_v47 = vld [vmem:[#allocation8 + $0x2] ss:$0 sm:$0xff]  ;;  %v817_v48 = vld [vmem:[#allocation8 + $0x1] ss:$0 sm:$0xff] }
  0xa1   : > { %988 = vmatpush3.bf16.msra.mxu1 %v987_v12  ;;  %958 = vmatprep.subr.bf16.mxu0 %v957_v13  ;;  %1126 = vpow2.f32 %v276_v28  ;;  %v822_v61 = vld [vmem:[#allocation6 + $0x4] ss:$0 sm:$0xff]  ;;  %v823_v62 = vld [vmem:[#allocation8 + $0x4] ss:$0 sm:$0xff]  ;;  %v431_v2 = vld [vmem:[#allocation9 + $0x208] sm:$0xff] }
  0xa2   : > { %990 = vmatprep.subr.bf16.mxu1 %v989_v17  ;;  %1128 = vpow2.f32 %v288_v36  ;;  %v448_v3 = vld [vmem:[#allocation9 + $0x290] sm:$0xff]  ;;  %v449_v4 = vld [vmem:[#allocation9 + $0x298] sm:$0xff]  ;;  %v999_v6 = vpack.c.bf16 %v431_v2, %v430_v1  ;;  %v450_v12 = vld [vmem:[#allocation9 + $0x2a0] sm:$0xff] }
  0xa3   : > { %v1001_v9 = vpack.c.bf16 %v449_v4, %v448_v3  ;;  %v432_v10 = vld [vmem:[#allocation9 + $0x210] sm:$0xff]  ;;  %v433_v11 = vld [vmem:[#allocation9 + $0x218] sm:$0xff]  ;;  %v451_v13 = vld [vmem:[#allocation9 + $0x2a8] sm:$0xff] }
  0xa4   : > { %960 = vmatpush3.bf16.msra.mxu0 %v959_v25  ;;  %v1003_v14 = vpack.c.bf16 %v433_v11, %v432_v10  ;;  %v1005_v15 = vpack.c.bf16 %v451_v13, %v450_v12  ;;  %v434_v17 = vld [vmem:[#allocation9 + $0x220] sm:$0xff]  ;;  %v435_v18 = vld [vmem:[#allocation9 + $0x228] sm:$0xff]  ;;  %v452_v19 = vld [vmem:[#allocation9 + $0x2b0] sm:$0xff] }
  0xa5   : > { %992 = vmatpush3.bf16.msra.mxu1 %v991_v29  ;;  %962 = vmatprep.subr.bf16.mxu0 %v961_v30  ;;  %v453_v20 = vld [vmem:[#allocation9 + $0x2b8] sm:$0xff]  ;;  %v1007_v21 = vpack.c.bf16 %v435_v18, %v434_v17  ;;  %v454_v24 = vld [vmem:[#allocation9 + $0x2c0] sm:$0xff]  ;;  %v455_v25 = vld [vmem:[#allocation9 + $0x2c8] sm:$0xff] }
  0xa6   : > { %994 = vmatprep.subr.bf16.mxu1 %v993_v34  ;;  %v1009_v22 = vpack.c.bf16 %v453_v20, %v452_v19  ;;  %v437_v23 = vld [vmem:[#allocation9 + $0x238] sm:$0xff]  ;;  %v1013_v27 = vpack.c.bf16 %v455_v25, %v454_v24  ;;  %v438_v28 = vld [vmem:[#allocation9 + $0x240] sm:$0xff]  ;;  %v439_v29 = vld [vmem:[#allocation9 + $0x248] sm:$0xff] }
  0xa7   : > { %v456_v30 = vld [vmem:[#allocation9 + $0x2d0] sm:$0xff]  ;;  %v457_v31 = vld [vmem:[#allocation9 + $0x2d8] sm:$0xff]  ;;  %v1015_v32 = vpack.c.bf16 %v439_v29, %v438_v28  ;;  %v458_v36 = vld [vmem:[#allocation9 + $0x2e0] sm:$0xff] }
  0xa8   : > { %964 = vmatpush3.bf16.msra.mxu0 %v963_v39  ;;  %v1017_v33 = vpack.c.bf16 %v457_v31, %v456_v30  ;;  %v440_v34 = vld [vmem:[#allocation9 + $0x250] sm:$0xff]  ;;  %v441_v35 = vld [vmem:[#allocation9 + $0x258] sm:$0xff]  ;;  %v459_v37 = vld [vmem:[#allocation9 + $0x2e8] sm:$0xff] }
  0xa9   : > { %996 = vmatpush3.bf16.msra.mxu1 %v995_v40  ;;  %998 = vmatprep.subr.bf16.mxu0 %v997_v41  ;;  %v1019_v38 = vpack.c.bf16 %v441_v35, %v440_v34  ;;  %v1021_v39 = vpack.c.bf16 %v459_v37, %v458_v36  ;;  %v442_v40 = vld [vmem:[#allocation9 + $0x260] sm:$0xff]  ;;  %v443_v41 = vld [vmem:[#allocation9 + $0x268] sm:$0xff] }
  0xaa   : > { %v1598_v45 = vpop.eup %1124 }
  0xab   : > { %v1127_v49 = vpop.eup %1126  ;;  %v295_v50 = vmul.f32 %v1598_v45, %v814_v42  ;;  %v323_v51 = vmul.f32 %v1598_v45, %v818_v43  ;;  %v309_v52 = vmul.f32 %v1598_v45, %v816_v44  ;;  %v351_v63 = vmul.f32 %v1598_v45, %v822_v61  ;;  %v460_v42 = vld [vmem:[#allocation9 + $0x2f0] sm:$0xff]  ;;  %v461_v43 = vld [vmem:[#allocation9 + $0x2f8] sm:$0xff] }
  0xac   : > { %v1603_v53 = vpop.eup %1128  ;;  %v278_v54 = vadd.f32 1.0, %v1127_v49  ;;  %v1023_v44 = vpack.c.bf16 %v443_v41, %v442_v40  ;;  %v444_v49 = vld [vmem:[#allocation9 + $0x270] sm:$0xff] }
  0xad   : > { %v301_v55 = vmul.f32 %v1603_v53, %v815_v46  ;;  %v329_v56 = vmul.f32 %v1603_v53, %v819_v47  ;;  %v315_v57 = vmul.f32 %v1603_v53, %v817_v48  ;;  %v357_v0 = vmul.f32 %v1603_v53, %v823_v62  ;;  %v820_v46 = vld [vmem:[#allocation6 + $0x3] ss:$0 sm:$0xff]  ;;  %v821_v47 = vld [vmem:[#allocation8 + $0x3] ss:$0 sm:$0xff] }
  0xae   : > { %1130 = vrcp.f32 %v278_v54  ;;  %v1025_v48 = vpack.c.bf16 %v461_v43, %v460_v42 }
  0xaf   : > { %v302_v58 = vmin.f32 %v295_v50, %v301_v55  ;;  %v330_v59 = vmin.f32 %v323_v51, %v329_v56  ;;  %v316_v60 = vmin.f32 %v309_v52, %v315_v57  ;;  %v358_v7 = vmin.f32 %v351_v63, %v357_v0  ;;  %v445_v50 = vld [vmem:[#allocation9 + $0x278] sm:$0xff] }
  0xb0   : > { %v337_v51 = vmul.f32 %v1598_v45, %v820_v46  ;;  %v343_v52 = vmul.f32 %v1603_v53, %v821_v47  ;;  %v1027_v54 = vpack.c.bf16 %v445_v50, %v444_v49 }
  0xb1   : > { %526 = vmatprep.mubr.f32.mxu0 %v302_v58  ;;  %596 = vmatprep.mubr.f32.mxu1 %v330_v59 }
  0xb2   : > { %597 = vmatmul.mubr.f32.vlgmr.msra.gmra.mrb[0].mxu1 %v316_v60  ;;  %v344_v55 = vmin.f32 %v337_v51, %v343_v52 }
  0xb8   : > { %v1131_v5 = vpop.eup %1130 }
  0xb9   : > { %v281_v8 = vmul.f32 %v1131_v5, %v1594_v16  ;;  %v436_v16 = vld [vmem:[#allocation9 + $0x230] sm:$0xff] }
  0xba   : > { %v1011_v26 = vpack.c.bf16 %v437_v23, %v436_v16 }
  0xbb   : > { %527 = vmatmul.mubr.f32.vlgmr.msra.gmra.mrb[0].mxu0 %v281_v8 }
  0xbc   : > { %1000 = vmatpush3.bf16.msra.mxu0 %v999_v6  ;;  %666 = vmatprep.mubr.f32.mxu0 %v358_v7 }
  0xbd   : > { %1002 = vmatprep.subr.bf16.mxu0 %v1001_v9 }
  0xc0   : > { %1004 = vmatpush3.bf16.msra.mxu0 %v1003_v14 }
  0xc1   : > { %1006 = vmatprep.subr.bf16.mxu0 %v1005_v15 }
  0xc4   : > { %1008 = vmatpush3.bf16.msra.mxu0 %v1007_v21 }
  0xc5   : > { %1010 = vmatprep.subr.bf16.mxu0 %v1009_v22 }
  0xc8   : > { %1012 = vmatpush3.bf16.msra.mxu0 %v1011_v26 }
  0xc9   : > { %1014 = vmatprep.subr.bf16.mxu0 %v1013_v27 }
  0xcc   : > { %1016 = vmatpush3.bf16.msra.mxu0 %v1015_v32 }
  0xcd   : > { %1018 = vmatprep.subr.bf16.mxu0 %v1017_v33 }
  0xd0   : > { %1020 = vmatpush3.bf16.msra.mxu0 %v1019_v38 }
  0xd1   : > { %1022 = vmatprep.subr.bf16.mxu0 %v1021_v39 }
  0xd4   : > { %1024 = vmatpush3.bf16.msra.mxu0 %v1023_v44 }
  0xd5   : > { %1026 = vmatprep.subr.bf16.mxu0 %v1025_v48 }
  0xd8   : > { %1028 = vmatpush3.bf16.msra.mxu0 %v1027_v54 }
  0xdb   : > { %667 = vmatmul.mubr.f32.vlgmr.msra.gmra.mrb[2].mxu0 %v344_v55 }
 0x185   : > { %v895_v56 = vpop.f32.mrb[0].mxu1 }
 0x186   : > { %v896_v57 = vpop.f32.mrb[1].mxu1 }
 0x187   : > { %v897_v58 = vadd.f32 %v896_v57, %v895_v56 }
 0x18e   : > { %v860_v59 = vpop.f32.mrb[0].mxu0 }
 0x18f   : > { %v861_v60 = vpop.f32.mrb[1].mxu0 }
 0x190   : > { %v862_v61 = vadd.f32 %v861_v60, %v860_v59 }
 0x192   : > { %v599_v62 = vadd.f32 %v897_v58, %v862_v61 }
 0x1ae   : > { %v930_v45 = vpop.f32.mrb[2].mxu0 }
 0x1af   : > { %v931_v63 = vpop.f32.mrb[3].mxu0 }
 0x1b0   : > { %v932_v53 = vadd.f32 %v931_v63, %v930_v45 }
 0x1b2   : > { %v669_v0 = vadd.f32 %v932_v53, %v599_v62 }
 0x1b4   : > { %672 = vst [vmem:[%s273_s25] sm:$0xff] %v669_v0 }
 0x1b5   : > { %1259 = shalt.err (!%p1256_p5)
}
 0x1b6   : > { %s1260_s5 = scalar_lea.hbm %s1619_s14, 128  ;;  %s1264_s10 = scalar_lea.hbm %s1672_s4, 256 }
 0x1b7   : > { %p1261_p10 = scmp.ne.s32.totalorder %s1619_s14, %s1260_s5  ;;  %p1265_p7 = scmp.lt.u32.totalorder %s1619_s14, %s1672_s4 }
 0x1b8   : > { %p1266_p3 = scmp.lt.u32.totalorder %s1264_s10, %s1260_s5  ;;  %p1268_p12 = scmp.lt.u32.totalorder %s1260_s5, %s1619_s14 }
 0x1b9   : > { %p1262_p13 = pnand %p1261_p10, %p1518_p2 }
 0x1ba   : > { %p1267_p11 = por %p1266_p3, %p1265_p7 }
 0x1bb   : > { %p1263_p9 = pneg %p1262_p13 }
 0x1bc   : > { %p1269_p1 = por %p1268_p12, %p1267_p11 }
 0x1be   : > { %p1270_p4 = pnand %p1269_p1, %p1263_p9 }
 0x1c0   : > { %1273 = shalt.err (!%p1270_p4)
}
 0x1c1   : > { %1043 = dma.vmem_to_hbm [thread:$0]  (%p1518_p2), %s1621_s27, 128, %s1619_s14, %s674_s29  }
 0x1c2 PF: > { %s700_s23 = sand.u32 1, %s1316_s15   ;;  %p1690_p6 = scmp.ne.s32.totalorder %s1680_s26, 0 }
 0x1c3   : > { %p1691_p8 = scmp.ge.s32.totalorder %s1336_s20, 2  ;;  %s701_s25 = scalar_lea.sflag [#allocation5], %s700_s23 }
 0x1c5   : > { %p1060_p0 = pnand %p1691_p8, %p1690_p6 }
 0x1c7   : > { %1311 = dma.done.wait (!%p1060_p0), %s701_s25, 128  }
 0x1c8   : > { %1313 = vsyncadd (!%p1060_p0), %s701_s25, 4294967168  ;;  %s22_s20 = sadd.s32 1, %s1336_s20   ;;  %s1692_s15 = smov %s1320_s16 }
 0x1c9   : > { %p19_p5 = scmp.ge.s32.totalorder %s22_s20, 4   ;;  %s1693_s16 = smov %s1324_s17 }
 0x1ca   : > { %s1694_s17 = smov %s1530_s12  ;;  %s1695_s18 = smov %s1332_s19 }
 0x1cb   : > { %s1696_s19 = smov %s1698_s7  ;;  %21 = sbr.rel (!%p19_p5) target bundleno = 8 (0x8), region = 94 }
 0x1d2   :  { %706 = vsyncpa [#allocation4], 1 }
 0x1d3   :  { %708 = vsyncpa [#allocation4 + $0x1], 1 }
 0x1d4   :  { %709 = vsyncpa [#allocation7], 1 }
 0x1d5   :  { %710 = vsyncpa [#allocation10], 1 }
 0x1d6   :  { %711 = vsyncpa [#allocation5], 1 }
 0x1d7   :  { %713 = vsyncpa [#allocation5 + $0x1], 1 }

</bundles_post_ra>
